<compile_context>
chip_gen: v7x
topology: tpu7x:2x2x1
jax: 0.10.0
libtpu: 0.0.40
codegen_flags: <defaults>
</compile_context>

<pallas_src>
import jax
import jax.numpy as jnp
from jax.experimental import pallas as pl
from jax.experimental.pallas import tpu as pltpu


# ----------------------------------------------------------------------------
# small helpers
# ----------------------------------------------------------------------------
def _round_up(x, m):
    return ((x + m - 1) // m) * m


def _pad_dim(dim):
    """Pad to a multiple of 128 (256 for large dims so bigger tiles divide)."""
    if dim <= 1024:
        return _round_up(dim, 128)
    return _round_up(dim, 256)


def _pick_tile(padded, max_tile=1024, min_blocks=1):
    """Largest 128-multiple tile <= max_tile dividing `padded` w/ >= min_blocks blocks."""
    for t in (1024, 768, 640, 512, 384, 256, 128):
        if t <= max_tile and padded % t == 0 and padded // t >= min_blocks:
            return t
    return 128


def _pad2(a, rows, cols, dtype):
    out = jnp.zeros((rows, cols), dtype)
    return out.at[:a.shape[0], :a.shape[1]].set(a.astype(dtype))


_PHYS_VMEM = None


def _physical_vmem_bytes():
    global _PHYS_VMEM
    if _PHYS_VMEM is None:
        try:
            _PHYS_VMEM = int(pltpu.get_tpu_info().vmem_capacity_bytes)
        except Exception:
            _PHYS_VMEM = 64 << 20          # conservative (v7x) fallback
    return _PHYS_VMEM


def _vmem_limit(need_bytes):
    """Scoped-VMEM limit: what the kernel needs, capped below physical VMEM."""
    cap = max(_physical_vmem_bytes() - (16 << 20), 32 << 20)
    return int(min(max(need_bytes, 8 << 20), cap))


# ----------------------------------------------------------------------------
# kernel 1: plain tiled matmul (no bias, no activation) -> bf16
# ----------------------------------------------------------------------------
def _mm_kernel(lhs_ref, rhs_ref, out_ref, acc_ref):
    k = pl.program_id(2)

    @pl.when(k == 0)
    def _():
        acc_ref[...] = jnp.zeros_like(acc_ref)

    acc_ref[...] += jnp.dot(lhs_ref[...], rhs_ref[...],
                            preferred_element_type=jnp.float32)

    @pl.when(k == pl.num_programs(2) - 1)
    def _():
        out_ref[...] = acc_ref[...].astype(out_ref.dtype)


def _tiled_matmul(lhs, rhs, *, out_dtype=jnp.bfloat16, tm, tn, tk):
    M, K = lhs.shape
    K2, N = rhs.shape
    assert K == K2 and M % tm == 0 and N % tn == 0 and K % tk == 0

    lb = jnp.dtype(lhs.dtype).itemsize
    rb = jnp.dtype(rhs.dtype).itemsize
    ob = jnp.dtype(out_dtype).itemsize
    vmem_need = (2 * (tm * tk * lb + tk * tn * rb + tm * tn * ob)
                 + tm * tn * 4 + (2 << 20))
    cost = pl.CostEstimate(
        flops=2 * M * N * K, transcendentals=0,
        bytes_accessed=M * K * lb + K * N * rb + M * N * ob)

    return pl.pallas_call(
        _mm_kernel,
        out_shape=jax.ShapeDtypeStruct((M, N), out_dtype),
        grid_spec=pltpu.PrefetchScalarGridSpec(
            num_scalar_prefetch=0,
            grid=(M // tm, N // tn, K // tk),
            in_specs=[pl.BlockSpec((tm, tk), lambda i, j, k: (i, k)),
                      pl.BlockSpec((tk, tn), lambda i, j, k: (k, j))],
            out_specs=pl.BlockSpec((tm, tn), lambda i, j, k: (i, j)),
            scratch_shapes=[pltpu.VMEM((tm, tn), jnp.float32)]),
        compiler_params=pltpu.CompilerParams(
            dimension_semantics=("parallel", "parallel", "arbitrary"),
            vmem_limit_bytes=_vmem_limit(vmem_need)),
        cost_estimate=cost,
    )(lhs, rhs)


# ----------------------------------------------------------------------------
# kernel 2: adjacency product  out = [dinv *] relu(dinv * (A @ rhs) + bias)
#   - rhs (the (NP, HP) intermediate) is kept fully VMEM-resident when it fits
#   - dinv (D^-1/2) is a (tm, 1) column block folded into the last-k epilogue
# ----------------------------------------------------------------------------
def _make_adj_kernel(out_scale, rhs_resident, tk):
    def kernel(a_ref, rhs_ref, scale_ref, bias_ref, out_ref, acc_ref):
        k = pl.program_id(1)

        @pl.when(k == 0)
        def _():
            acc_ref[...] = jnp.zeros_like(acc_ref)

        if rhs_resident:
            koff = pl.multiple_of(k * tk, tk)
            rhs = rhs_ref[pl.ds(koff, tk), :]
        else:
            rhs = rhs_ref[...]
        acc_ref[...] += jnp.dot(a_ref[...], rhs,
                                preferred_element_type=jnp.float32)

        @pl.when(k == pl.num_programs(1) - 1)
        def _():
            r = acc_ref[...] * scale_ref[...] + bias_ref[...]
            r = jnp.maximum(r, 0.0)
            if out_scale:
                r = r * scale_ref[...]          # fold next layer's D^-1/2
            out_ref[...] = r.astype(out_ref.dtype)

    return kernel


def _adj_matmul(A, rhs, dinv_col, bias, *, out_scale, tm, tk,
                out_dtype=jnp.bfloat16):
    M, K = A.shape
    K2, Nw = rhs.shape
    assert K == K2 and M % tm == 0 and K % tk == 0

    ab = jnp.dtype(A.dtype).itemsize
    rb = jnp.dtype(rhs.dtype).itemsize
    ob = jnp.dtype(out_dtype).itemsize

    rhs_bytes = K * Nw * rb
    rhs_resident = (2 * rhs_bytes) <= (16 << 20)   # double-buffered fits easily
    if rhs_resident:
        rhs_spec = pl.BlockSpec((K, Nw), lambda i, k: (0, 0))
        rhs_vmem = 2 * rhs_bytes
        rhs_traffic = rhs_bytes                    # fetched exactly once
    else:
        rhs_spec = pl.BlockSpec((tk, Nw), lambda i, k: (k, 0))
        rhs_vmem = 2 * tk * Nw * rb
        rhs_traffic = (M // tm) * rhs_bytes

    vmem_need = (2 * (tm * tk * ab + tm * 4 + Nw * 4 + tm * Nw * ob)
                 + rhs_vmem + tm * Nw * 4 + (2 << 20))
    cost = pl.CostEstimate(
        flops=2 * M * Nw * K, transcendentals=0,
        bytes_accessed=M * K * ab + rhs_traffic + M * 4 + Nw * 4 + M * Nw * ob)

    return pl.pallas_call(
        _make_adj_kernel(out_scale, rhs_resident, tk),
        out_shape=jax.ShapeDtypeStruct((M, Nw), out_dtype),
        grid_spec=pltpu.PrefetchScalarGridSpec(
            num_scalar_prefetch=0,
            grid=(M // tm, K // tk),
            in_specs=[pl.BlockSpec((tm, tk), lambda i, k: (i, k)),
                      rhs_spec,
                      pl.BlockSpec((tm, 1), lambda i, k: (i, 0)),
                      pl.BlockSpec((1, Nw), lambda i, k: (0, 0))],
            out_specs=pl.BlockSpec((tm, Nw), lambda i, k: (i, 0)),
            scratch_shapes=[pltpu.VMEM((tm, Nw), jnp.float32)]),
        compiler_params=pltpu.CompilerParams(
            dimension_semantics=("parallel", "arbitrary"),
            vmem_limit_bytes=_vmem_limit(vmem_need)),
        cost_estimate=cost,
    )(A, rhs, dinv_col, bias)


# ----------------------------------------------------------------------------
# kernel 3: fused global_mean_pool + final Linear  (out = (P @ h) @ Wl + bl)
# ----------------------------------------------------------------------------
def _pool_linear(Pm, h, Wl, bl, *, tk):
    G, K = Pm.shape
    K2, H = h.shape
    H2, O = Wl.shape
    assert K == K2 and H == H2 and K % tk == 0

    def kernel(p_ref, h_ref, wl_ref, bl_ref, out_ref, acc_ref):
        k = pl.program_id(0)

        @pl.when(k == 0)
        def _():
            acc_ref[...] = jnp.zeros_like(acc_ref)

        acc_ref[...] += jnp.dot(p_ref[...], h_ref[...],
                                preferred_element_type=jnp.float32)

        @pl.when(k == pl.num_programs(0) - 1)
        def _():
            pooled = acc_ref[...].astype(wl_ref.dtype)
            res = jnp.dot(pooled, wl_ref[...],
                          preferred_element_type=jnp.float32) + bl_ref[...]
            out_ref[...] = res.astype(out_ref.dtype)

    pb = jnp.dtype(Pm.dtype).itemsize
    hb = jnp.dtype(h.dtype).itemsize
    wb = jnp.dtype(Wl.dtype).itemsize
    vmem_need = (2 * (G * tk * pb + tk * H * hb + H * O * wb + O * 4 + G * O * 4)
                 + G * H * 4 + (2 << 20))
    cost = pl.CostEstimate(
        flops=2 * G * H * K + 2 * G * O * H, transcendentals=0,
        bytes_accessed=G * K * pb + K * H * hb + H * O * wb + O * 4 + G * O * 4)

    return pl.pallas_call(
        kernel,
        out_shape=jax.ShapeDtypeStruct((G, O), jnp.float32),
        grid_spec=pltpu.PrefetchScalarGridSpec(
            num_scalar_prefetch=0,
            grid=(K // tk,),
            in_specs=[pl.BlockSpec((G, tk), lambda k: (0, k)),
                      pl.BlockSpec((tk, H), lambda k: (k, 0)),
                      pl.BlockSpec((H, O), lambda k: (0, 0)),
                      pl.BlockSpec((1, O), lambda k: (0, 0))],
            out_specs=pl.BlockSpec((G, O), lambda k: (0, 0)),
            scratch_shapes=[pltpu.VMEM((G, H), jnp.float32)]),
        compiler_params=pltpu.CompilerParams(
            dimension_semantics=("arbitrary",),
            vmem_limit_bytes=_vmem_limit(vmem_need)),
        cost_estimate=cost,
    )(Pm, h, Wl, bl)


# ----------------------------------------------------------------------------
# forward pass
# ----------------------------------------------------------------------------
def oracle_net_gnn(x, edge_index, batch, params, num_graphs, edge_attr=None):
    """Forward pass of OracleNetGNN (inference mode)."""
    x = x.astype(jnp.float32)
    N, F = x.shape
    H = params["w1"].shape[1]
    O = params["wl"].shape[1]
    G = num_graphs

    # ---- edge_weight handling (mirrors the PyTorch branches) ----
    edge_weight = None
    if edge_attr is not None:
        if edge_attr.ndim > 1 and edge_attr.shape[1] == 1:
            edge_weight = jnp.squeeze(edge_attr)
        elif edge_attr.ndim == 1:
            edge_weight = edge_attr

    src, dst = edge_index[0], edge_index[1]
    w = (jnp.ones(src.shape[0], jnp.float32) if edge_weight is None
         else edge_weight.astype(jnp.float32))
    # PyG gcn_norm: drop existing self-loops, then add self-loops with weight 1.
    w = jnp.where(src == dst, 0.0, w)

    # degree (incl. added self-loop) and D^-1/2, from the edge list only (O(E)).
    deg = jnp.ones((N,), jnp.float32).at[dst].add(w)
    dinv = jnp.where(deg > 0, jax.lax.rsqrt(deg), 0.0)

    # ---- padding / tile selection ----
    NP, FP, HP, OP = _pad_dim(N), _pad_dim(F), _pad_dim(H), _pad_dim(O)
    GP = _round_up(G, 8)
    tm_n = _pick_tile(NP, 1024, min_blocks=2)   # >= 2 row blocks for megacore
    tk_n = _pick_tile(NP, 1024, min_blocks=1)
    TH = _pick_tile(HP, 512)
    TF = _pick_tile(FP, 512)

    bf16 = jnp.bfloat16
    # Un-normalized adjacency (self-loops = 1) scattered straight into the
    # padded bf16 buffer; D^-1/2 is applied inside the kernels.
    # TODO(synk): for very large/sparse graphs the dense O(N^2) adjacency itself
    #             is the limit; a scalar-prefetch gather kernel over neighbor
    #             lists would be needed there.
    diag = jnp.arange(N)
    A_p = (jnp.zeros((NP, NP), bf16)
           .at[dst, src].add(w.astype(bf16))
           .at[diag, diag].add(1.0))
    dinv_col = jnp.zeros((NP, 1), jnp.float32).at[:N, 0].set(dinv)

    # mean-pool matrix (tiny, built in XLA)
    onehot = (batch[None, :] == jnp.arange(G)[:, None]).astype(jnp.float32)
    counts = onehot.sum(axis=1, keepdims=True)
    P = onehot / jnp.maximum(counts, 1.0)

    X_s = _pad2(dinv[:, None] * x, NP, FP, bf16)      # pre-scaled by D^-1/2
    W1_p = _pad2(params["w1"], FP, HP, bf16)
    W2_p = _pad2(params["w2"], HP, HP, bf16)
    P_p = _pad2(P, GP, NP, bf16)
    Wl_p = _pad2(params["wl"], HP, OP, bf16)
    b1_p = _pad2(params["b1"][None, :], 1, HP, jnp.float32)
    b2_p = _pad2(params["b2"][None, :], 1, HP, jnp.float32)
    bl_p = _pad2(params["bl"][None, :], 1, OP, jnp.float32)

    # ---- GCN layer 1:  h1_s = D^-1/2 * relu(D^-1/2 * (A @ (X_s @ W1)) + b1) ----
    xw1 = _tiled_matmul(X_s, W1_p, tm=tm_n, tn=TH, tk=TF)
    h1_s = _adj_matmul(A_p, xw1, dinv_col, b1_p, out_scale=True,
                       tm=tm_n, tk=tk_n)

    # ---- GCN layer 2:  h2 = relu(D^-1/2 * (A @ (h1_s @ W2)) + b2) ----
    hw2 = _tiled_matmul(h1_s, W2_p, tm=tm_n, tn=TH, tk=TH)
    h2 = _adj_matmul(A_p, hw2, dinv_col, b2_p, out_scale=False,
                     tm=tm_n, tk=tk_n)

    # ---- fused global_mean_pool + final Linear (dropout = identity in eval) ----
    # TODO(synk): F.dropout(p=0.5, training=True) randomness is not reproduced;
    #             kernels implement inference-mode (dropout = identity).
    out_padded = _pool_linear(P_p, h2, Wl_p, bl_p, tk=tk_n)
    return out_padded[:G, :O]


# ----------------------------------------------------------------------------
# params / reference / test
# ----------------------------------------------------------------------------
def init_params(key, num_node_features, hidden_channels, num_out=1):
    k1, k2, k3 = jax.random.split(key, 3)

    def glorot(k, fan_in, fan_out):
        scale = jnp.sqrt(6.0 / (fan_in + fan_out))
        return jax.random.uniform(k, (fan_in, fan_out), jnp.float32, -scale, scale)

    return {
        "w1": glorot(k1, num_node_features, hidden_channels),
        "b1": jnp.zeros((hidden_channels,), jnp.float32),
        "w2": glorot(k2, hidden_channels, hidden_channels),
        "b2": jnp.zeros((hidden_channels,), jnp.float32),
        "wl": glorot(k3, hidden_channels, num_out),
        "bl": jnp.zeros((num_out,), jnp.float32),
    }


def _reference(x, edge_index, batch, params, num_graphs):
    """Plain-JAX f32 reference (PyG gcn_norm semantics) for sanity checking."""
    N = x.shape[0]
    src, dst = edge_index[0], edge_index[1]
    w = jnp.where(src == dst, 0.0, 1.0).astype(jnp.float32)
    A = jnp.zeros((N, N), jnp.float32).at[dst, src].add(w) + jnp.eye(N)
    deg = A.sum(axis=1)
    dinv = jnp.where(deg > 0, deg ** -0.5, 0.0)
    A_hat = dinv[:, None] * A * dinv[None, :]
    h = jnp.maximum(A_hat @ (x @ params["w1"]) + params["b1"], 0.0)
    h = jnp.maximum(A_hat @ (h @ params["w2"]) + params["b2"], 0.0)
    onehot = (batch[None, :] == jnp.arange(num_graphs)[:, None]).astype(jnp.float32)
    pooled = (onehot @ h) / jnp.maximum(onehot.sum(axis=1, keepdims=True), 1.0)
    return pooled @ params["wl"] + params["bl"]


if __name__ == "__main__":
    key = jax.random.PRNGKey(0)
    kx, ke, kp = jax.random.split(key, 3)

    num_node_features = 4
    hidden_channels = 32
    num_out = 1
    N = 16            # nodes
    E = 24            # directed edges
    G = 2             # graphs in the batch

    x = jax.random.normal(kx, (N, num_node_features), jnp.float32)
    # random edges kept within each graph's node range (graph 0: 0..7, graph 1: 8..15)
    src0 = jax.random.randint(ke, (E // 2,), 0, 8)
    dst0 = jax.random.randint(jax.random.fold_in(ke, 1), (E // 2,), 0, 8)
    src1 = jax.random.randint(jax.random.fold_in(ke, 2), (E // 2,), 8, 16)
    dst1 = jax.random.randint(jax.random.fold_in(ke, 3), (E // 2,), 8, 16)
    edge_index = jnp.stack([jnp.concatenate([src0, src1]),
                            jnp.concatenate([dst0, dst1])]).astype(jnp.int32)
    batch = jnp.concatenate([jnp.zeros(8, jnp.int32), jnp.ones(8, jnp.int32)])

    params = init_params(kp, num_node_features, hidden_channels, num_out)

    fwd = jax.jit(oracle_net_gnn, static_argnames=("num_graphs",))
    out = jax.block_until_ready(fwd(x, edge_index, batch, params, num_graphs=G))

    ref = _reference(x, edge_index, batch, params, G)
    assert out.shape == (G, num_out)
    # bf16 MXU inputs -> small numerical drift vs the f32 reference is expected.
    assert jnp.allclose(out, ref, atol=5e-2, rtol=5e-2), (out, ref)

    print("KERNEL_OK")
</pallas_src>

<mosaic_0001>
module attributes {stable_mosaic.version = 11 : i64} {
  func.func @_mm_kernel(%arg0: i32, %arg1: i32, %arg2: i32, %arg3: memref<128x128xbf16, #tpu.memory_space<vmem>>, %arg4: memref<128x128xbf16, #tpu.memory_space<vmem>>, %arg5: memref<128x128xbf16, #tpu.memory_space<vmem>>, %arg6: memref<128x128xf32, #tpu.memory_space<vmem>>) attributes {dimension_semantics = [#tpu.dimension_semantics<parallel>, #tpu.dimension_semantics<parallel>, #tpu.dimension_semantics<arbitrary>], iteration_bounds = array<i64: 1, 1, 1>, scalar_prefetch = 0 : i64, scratch_operands = 1 : i64, tpu.core_type = #tpu.core_type<tc>, window_params = [{transform_indices = @transform_0, window_bounds = array<i64: 128, 128>}, {transform_indices = @transform_1, window_bounds = array<i64: 128, 128>}, {transform_indices = @transform_2, window_bounds = array<i64: 128, 128>}]} {
    %c0_i32 = arith.constant 0 : i32
    %0 = arith.cmpi eq, %arg2, %c0_i32 : i32
    %1 = arith.extui %0 : i1 to i32
    %c0_i32_0 = arith.constant 0 : i32
    %2 = arith.cmpi ne, %1, %c0_i32_0 : i32
    scf.if %2 {
      %cst_10 = arith.constant 0.000000e+00 : f32
      %12 = vector.broadcast %cst_10 : f32 to vector<128x128xf32>
      %c0_11 = arith.constant 0 : index
      %c0_12 = arith.constant 0 : index
      %13 = vector.load %arg6[%c0_11, %c0_12] : memref<128x128xf32, #tpu.memory_space<vmem>>, vector<128x128xf32>
      tpu.vector_store %arg6[%c0_11, %c0_12], %12 {strides = array<i32>} : memref<128x128xf32, #tpu.memory_space<vmem>>, vector<128x128xf32>,
    } else {
    }
    %c0 = arith.constant 0 : index
    %c0_1 = arith.constant 0 : index
    %3 = vector.load %arg6[%c0, %c0_1] : memref<128x128xf32, #tpu.memory_space<vmem>>, vector<128x128xf32>
    %c0_2 = arith.constant 0 : index
    %c0_3 = arith.constant 0 : index
    %4 = vector.load %arg3[%c0_2, %c0_3] : memref<128x128xbf16, #tpu.memory_space<vmem>>, vector<128x128xbf16>
    %c0_4 = arith.constant 0 : index
    %c0_5 = arith.constant 0 : index
    %5 = vector.load %arg4[%c0_4, %c0_5] : memref<128x128xbf16, #tpu.memory_space<vmem>>, vector<128x128xbf16>
    %cst = arith.constant dense<0.000000e+00> : vector<128x128xf32>
    %6 = tpu.matmul %4, %5, %cst {dimension_numbers = #tpu.dot_dimension_numbers<[1], [0], [0], [1], [0, 0, 1, 1], [], []>} : vector<128x128xbf16>, vector<128x128xbf16>, vector<128x128xf32> -> vector<128x128xf32>
    %7 = arith.addf %3, %6 : vector<128x128xf32>
    %c0_6 = arith.constant 0 : index
    %c0_7 = arith.constant 0 : index
    %8 = vector.load %arg6[%c0_6, %c0_7] : memref<128x128xf32, #tpu.memory_space<vmem>>, vector<128x128xf32>
    tpu.vector_store %arg6[%c0_6, %c0_7], %7 {strides = array<i32>} : memref<128x128xf32, #tpu.memory_space<vmem>>, vector<128x128xf32>,
    %c0_i32_8 = arith.constant 0 : i32
    %9 = arith.cmpi eq, %arg2, %c0_i32_8 : i32
    %10 = arith.extui %9 : i1 to i32
    %c0_i32_9 = arith.constant 0 : i32
    %11 = arith.cmpi ne, %10, %c0_i32_9 : i32
    scf.if %11 {
      %c0_10 = arith.constant 0 : index
      %c0_11 = arith.constant 0 : index
      %12 = vector.load %arg6[%c0_10, %c0_11] : memref<128x128xf32, #tpu.memory_space<vmem>>, vector<128x128xf32>
      %13 = arith.truncf %12 : vector<128x128xf32> to vector<128x128xbf16>
      %c0_12 = arith.constant 0 : index
      %c0_13 = arith.constant 0 : index
      %14 = vector.load %arg5[%c0_12, %c0_13] : memref<128x128xbf16, #tpu.memory_space<vmem>>, vector<128x128xbf16>
      tpu.vector_store %arg5[%c0_12, %c0_13], %13 {strides = array<i32>} : memref<128x128xbf16, #tpu.memory_space<vmem>>, vector<128x128xbf16>,
    } else {
    }
    return
  }
  func.func @transform_0(%arg0: i32, %arg1: i32, %arg2: i32) -> (i32, i32) {
    %c0_i32 = arith.constant 0 : i32
    return %arg0, %arg2 : i32, i32
  }
  func.func @transform_1(%arg0: i32, %arg1: i32, %arg2: i32) -> (i32, i32) {
    %c0_i32 = arith.constant 0 : i32
    return %arg2, %arg1 : i32, i32
  }
  func.func @transform_2(%arg0: i32, %arg1: i32, %arg2: i32) -> (i32, i32) {
    %c0_i32 = arith.constant 0 : i32
    return %arg0, %arg1 : i32, i32
  }
}

module attributes {stable_mosaic.version = 11 : i64} {
  func.func @kernel(%arg0: i32, %arg1: i32, %arg2: memref<128x128xbf16, #tpu.memory_space<vmem>>, %arg3: memref<128x128xbf16, #tpu.memory_space<vmem>>, %arg4: memref<128x1xf32, #tpu.memory_space<vmem>>, %arg5: memref<1x128xf32, #tpu.memory_space<vmem>>, %arg6: memref<128x128xbf16, #tpu.memory_space<vmem>>, %arg7: memref<128x128xf32, #tpu.memory_space<vmem>>) attributes {dimension_semantics = [#tpu.dimension_semantics<parallel>, #tpu.dimension_semantics<arbitrary>], iteration_bounds = array<i64: 1, 1>, scalar_prefetch = 0 : i64, scratch_operands = 1 : i64, tpu.core_type = #tpu.core_type<tc>, window_params = [{transform_indices = @transform_0, window_bounds = array<i64: 128, 128>}, {pipeline_mode = #tpu.pipeline_mode<synchronous>, transform_indices = @transform_1, window_bounds = array<i64: 128, 128>}, {transform_indices = @transform_2, window_bounds = array<i64: 128, 1>}, {pipeline_mode = #tpu.pipeline_mode<synchronous>, transform_indices = @transform_3, window_bounds = array<i64: 1, 128>}, {transform_indices = @transform_4, window_bounds = array<i64: 128, 128>}]} {
    %c0_i32 = arith.constant 0 : i32
    %0 = arith.cmpi eq, %arg1, %c0_i32 : i32
    %1 = arith.extui %0 : i1 to i32
    %c0_i32_0 = arith.constant 0 : i32
    %2 = arith.cmpi ne, %1, %c0_i32_0 : i32
    scf.if %2 {
      %cst_9 = arith.constant 0.000000e+00 : f32
      %15 = vector.broadcast %cst_9 : f32 to vector<128x128xf32>
      %c0_10 = arith.constant 0 : index
      %c0_11 = arith.constant 0 : index
      %16 = vector.load %arg7[%c0_10, %c0_11] : memref<128x128xf32, #tpu.memory_space<vmem>>, vector<128x128xf32>
      tpu.vector_store %arg7[%c0_10, %c0_11], %15 {strides = array<i32>} : memref<128x128xf32, #tpu.memory_space<vmem>>, vector<128x128xf32>,
    } else {
    }
    %c128_i32 = arith.constant 128 : i32
    %3 = arith.muli %arg1, %c128_i32 : i32
    %4 = tpu.assume_multiple %3, 128 : i32
    %5 = arith.index_cast %4 : i32 to index
    %c0 = arith.constant 0 : index
    %6 = vector.load %arg3[%5, %c0] : memref<128x128xbf16, #tpu.memory_space<vmem>>, vector<128x128xbf16>
    %c0_1 = arith.constant 0 : index
    %c0_2 = arith.constant 0 : index
    %7 = vector.load %arg7[%c0_1, %c0_2] : memref<128x128xf32, #tpu.memory_space<vmem>>, vector<128x128xf32>
    %c0_3 = arith.constant 0 : index
    %c0_4 = arith.constant 0 : index
    %8 = vector.load %arg2[%c0_3, %c0_4] : memref<128x128xbf16, #tpu.memory_space<vmem>>, vector<128x128xbf16>
    %cst = arith.constant dense<0.000000e+00> : vector<128x128xf32>
    %9 = tpu.matmul %8, %6, %cst {dimension_numbers = #tpu.dot_dimension_numbers<[1], [0], [0], [1], [0, 0, 1, 1], [], []>} : vector<128x128xbf16>, vector<128x128xbf16>, vector<128x128xf32> -> vector<128x128xf32>
    %10 = arith.addf %7, %9 : vector<128x128xf32>
    %c0_5 = arith.constant 0 : index
    %c0_6 = arith.constant 0 : index
    %11 = vector.load %arg7[%c0_5, %c0_6] : memref<128x128xf32, #tpu.memory_space<vmem>>, vector<128x128xf32>
    tpu.vector_store %arg7[%c0_5, %c0_6], %10 {strides = array<i32>} : memref<128x128xf32, #tpu.memory_space<vmem>>, vector<128x128xf32>,
    %c0_i32_7 = arith.constant 0 : i32
    %12 = arith.cmpi eq, %arg1, %c0_i32_7 : i32
    %13 = arith.extui %12 : i1 to i32
    %c0_i32_8 = arith.constant 0 : i32
    %14 = arith.cmpi ne, %13, %c0_i32_8 : i32
    scf.if %14 {
      %c0_9 = arith.constant 0 : index
      %c0_10 = arith.constant 0 : index
      %15 = vector.load %arg7[%c0_9, %c0_10] : memref<128x128xf32, #tpu.memory_space<vmem>>, vector<128x128xf32>
      %c0_11 = arith.constant 0 : index
      %c0_12 = arith.constant 0 : index
      %16 = vector.load %arg4[%c0_11, %c0_12] : memref<128x1xf32, #tpu.memory_space<vmem>>, vector<128x1xf32>
      %17 = vector.broadcast %16 : vector<128x1xf32> to vector<128x128xf32>
      %18 = arith.mulf %15, %17 : vector<128x128xf32>
      %c0_13 = arith.constant 0 : index
      %c0_14 = arith.constant 0 : index
      %19 = vector.load %arg5[%c0_13, %c0_14] : memref<1x128xf32, #tpu.memory_space<vmem>>, vector<1x128xf32>
      %20 = vector.broadcast %19 : vector<1x128xf32> to vector<128x128xf32>
      %21 = arith.addf %18, %20 : vector<128x128xf32>
      %cst_15 = arith.constant 0.000000e+00 : f32
      %22 = vector.broadcast %cst_15 : f32 to vector<128x128xf32>
      %23 = arith.maximumf %21, %22 : vector<128x128xf32>
      %c0_16 = arith.constant 0 : index
      %c0_17 = arith.constant 0 : index
      %24 = vector.load %arg4[%c0_16, %c0_17] : memref<128x1xf32, #tpu.memory_space<vmem>>, vector<128x1xf32>
      %25 = vector.broadcast %24 : vector<128x1xf32> to vector<128x128xf32>
      %26 = arith.mulf %23, %25 : vector<128x128xf32>
      %27 = arith.truncf %26 : vector<128x128xf32> to vector<128x128xbf16>
      %c0_18 = arith.constant 0 : index
      %c0_19 = arith.constant 0 : index
      %28 = vector.load %arg6[%c0_18, %c0_19] : memref<128x128xbf16, #tpu.memory_space<vmem>>, vector<128x128xbf16>
      tpu.vector_store %arg6[%c0_18, %c0_19], %27 {strides = array<i32>} : memref<128x128xbf16, #tpu.memory_space<vmem>>, vector<128x128xbf16>,
    } else {
    }
    return
  }
  func.func @transform_0(%arg0: i32, %arg1: i32) -> (i32, i32) {
    %c0_i32 = arith.constant 0 : i32
    return %arg0, %arg1 : i32, i32
  }
  func.func @transform_1(%arg0: i32, %arg1: i32) -> (i32, i32) {
    %c0_i32 = arith.constant 0 : i32
    %c0_i32_0 = arith.constant 0 : i32
    %c0_i32_1 = arith.constant 0 : i32
    return %c0_i32, %c0_i32_0 : i32, i32
  }
  func.func @transform_2(%arg0: i32, %arg1: i32) -> (i32, i32) {
    %c0_i32 = arith.constant 0 : i32
    %c0_i32_0 = arith.constant 0 : i32
    return %arg0, %c0_i32 : i32, i32
  }
  func.func @transform_3(%arg0: i32, %arg1: i32) -> (i32, i32) {
    %c0_i32 = arith.constant 0 : i32
    %c0_i32_0 = arith.constant 0 : i32
    %c0_i32_1 = arith.constant 0 : i32
    return %c0_i32, %c0_i32_0 : i32, i32
  }
  func.func @transform_4(%arg0: i32, %arg1: i32) -> (i32, i32) {
    %c0_i32 = arith.constant 0 : i32
    %c0_i32_0 = arith.constant 0 : i32
    return %arg0, %c0_i32 : i32, i32
  }
}

module attributes {stable_mosaic.version = 11 : i64} {
  func.func @kernel(%arg0: i32, %arg1: i32, %arg2: memref<128x128xbf16, #tpu.memory_space<vmem>>, %arg3: memref<128x128xbf16, #tpu.memory_space<vmem>>, %arg4: memref<128x1xf32, #tpu.memory_space<vmem>>, %arg5: memref<1x128xf32, #tpu.memory_space<vmem>>, %arg6: memref<128x128xbf16, #tpu.memory_space<vmem>>, %arg7: memref<128x128xf32, #tpu.memory_space<vmem>>) attributes {dimension_semantics = [#tpu.dimension_semantics<parallel>, #tpu.dimension_semantics<arbitrary>], iteration_bounds = array<i64: 1, 1>, scalar_prefetch = 0 : i64, scratch_operands = 1 : i64, tpu.core_type = #tpu.core_type<tc>, window_params = [{transform_indices = @transform_0, window_bounds = array<i64: 128, 128>}, {pipeline_mode = #tpu.pipeline_mode<synchronous>, transform_indices = @transform_1, window_bounds = array<i64: 128, 128>}, {transform_indices = @transform_2, window_bounds = array<i64: 128, 1>}, {pipeline_mode = #tpu.pipeline_mode<synchronous>, transform_indices = @transform_3, window_bounds = array<i64: 1, 128>}, {transform_indices = @transform_4, window_bounds = array<i64: 128, 128>}]} {
    %c0_i32 = arith.constant 0 : i32
    %0 = arith.cmpi eq, %arg1, %c0_i32 : i32
    %1 = arith.extui %0 : i1 to i32
    %c0_i32_0 = arith.constant 0 : i32
    %2 = arith.cmpi ne, %1, %c0_i32_0 : i32
    scf.if %2 {
      %cst_9 = arith.constant 0.000000e+00 : f32
      %15 = vector.broadcast %cst_9 : f32 to vector<128x128xf32>
      %c0_10 = arith.constant 0 : index
      %c0_11 = arith.constant 0 : index
      %16 = vector.load %arg7[%c0_10, %c0_11] : memref<128x128xf32, #tpu.memory_space<vmem>>, vector<128x128xf32>
      tpu.vector_store %arg7[%c0_10, %c0_11], %15 {strides = array<i32>} : memref<128x128xf32, #tpu.memory_space<vmem>>, vector<128x128xf32>,
    } else {
    }
    %c128_i32 = arith.constant 128 : i32
    %3 = arith.muli %arg1, %c128_i32 : i32
    %4 = tpu.assume_multiple %3, 128 : i32
    %5 = arith.index_cast %4 : i32 to index
    %c0 = arith.constant 0 : index
    %6 = vector.load %arg3[%5, %c0] : memref<128x128xbf16, #tpu.memory_space<vmem>>, vector<128x128xbf16>
    %c0_1 = arith.constant 0 : index
    %c0_2 = arith.constant 0 : index
    %7 = vector.load %arg7[%c0_1, %c0_2] : memref<128x128xf32, #tpu.memory_space<vmem>>, vector<128x128xf32>
    %c0_3 = arith.constant 0 : index
    %c0_4 = arith.constant 0 : index
    %8 = vector.load %arg2[%c0_3, %c0_4] : memref<128x128xbf16, #tpu.memory_space<vmem>>, vector<128x128xbf16>
    %cst = arith.constant dense<0.000000e+00> : vector<128x128xf32>
    %9 = tpu.matmul %8, %6, %cst {dimension_numbers = #tpu.dot_dimension_numbers<[1], [0], [0], [1], [0, 0, 1, 1], [], []>} : vector<128x128xbf16>, vector<128x128xbf16>, vector<128x128xf32> -> vector<128x128xf32>
    %10 = arith.addf %7, %9 : vector<128x128xf32>
    %c0_5 = arith.constant 0 : index
    %c0_6 = arith.constant 0 : index
    %11 = vector.load %arg7[%c0_5, %c0_6] : memref<128x128xf32, #tpu.memory_space<vmem>>, vector<128x128xf32>
    tpu.vector_store %arg7[%c0_5, %c0_6], %10 {strides = array<i32>} : memref<128x128xf32, #tpu.memory_space<vmem>>, vector<128x128xf32>,
    %c0_i32_7 = arith.constant 0 : i32
    %12 = arith.cmpi eq, %arg1, %c0_i32_7 : i32
    %13 = arith.extui %12 : i1 to i32
    %c0_i32_8 = arith.constant 0 : i32
    %14 = arith.cmpi ne, %13, %c0_i32_8 : i32
    scf.if %14 {
      %c0_9 = arith.constant 0 : index
      %c0_10 = arith.constant 0 : index
      %15 = vector.load %arg7[%c0_9, %c0_10] : memref<128x128xf32, #tpu.memory_space<vmem>>, vector<128x128xf32>
      %c0_11 = arith.constant 0 : index
      %c0_12 = arith.constant 0 : index
      %16 = vector.load %arg4[%c0_11, %c0_12] : memref<128x1xf32, #tpu.memory_space<vmem>>, vector<128x1xf32>
      %17 = vector.broadcast %16 : vector<128x1xf32> to vector<128x128xf32>
      %18 = arith.mulf %15, %17 : vector<128x128xf32>
      %c0_13 = arith.constant 0 : index
      %c0_14 = arith.constant 0 : index
      %19 = vector.load %arg5[%c0_13, %c0_14] : memref<1x128xf32, #tpu.memory_space<vmem>>, vector<1x128xf32>
      %20 = vector.broadcast %19 : vector<1x128xf32> to vector<128x128xf32>
      %21 = arith.addf %18, %20 : vector<128x128xf32>
      %cst_15 = arith.constant 0.000000e+00 : f32
      %22 = vector.broadcast %cst_15 : f32 to vector<128x128xf32>
      %23 = arith.maximumf %21, %22 : vector<128x128xf32>
      %24 = arith.truncf %23 : vector<128x128xf32> to vector<128x128xbf16>
      %c0_16 = arith.constant 0 : index
      %c0_17 = arith.constant 0 : index
      %25 = vector.load %arg6[%c0_16, %c0_17] : memref<128x128xbf16, #tpu.memory_space<vmem>>, vector<128x128xbf16>
      tpu.vector_store %arg6[%c0_16, %c0_17], %24 {strides = array<i32>} : memref<128x128xbf16, #tpu.memory_space<vmem>>, vector<128x128xbf16>,
    } else {
    }
    return
  }
  func.func @transform_0(%arg0: i32, %arg1: i32) -> (i32, i32) {
    %c0_i32 = arith.constant 0 : i32
    return %arg0, %arg1 : i32, i32
  }
  func.func @transform_1(%arg0: i32, %arg1: i32) -> (i32, i32) {
    %c0_i32 = arith.constant 0 : i32
    %c0_i32_0 = arith.constant 0 : i32
    %c0_i32_1 = arith.constant 0 : i32
    return %c0_i32, %c0_i32_0 : i32, i32
  }
  func.func @transform_2(%arg0: i32, %arg1: i32) -> (i32, i32) {
    %c0_i32 = arith.constant 0 : i32
    %c0_i32_0 = arith.constant 0 : i32
    return %arg0, %c0_i32 : i32, i32
  }
  func.func @transform_3(%arg0: i32, %arg1: i32) -> (i32, i32) {
    %c0_i32 = arith.constant 0 : i32
    %c0_i32_0 = arith.constant 0 : i32
    %c0_i32_1 = arith.constant 0 : i32
    return %c0_i32, %c0_i32_0 : i32, i32
  }
  func.func @transform_4(%arg0: i32, %arg1: i32) -> (i32, i32) {
    %c0_i32 = arith.constant 0 : i32
    %c0_i32_0 = arith.constant 0 : i32
    return %arg0, %c0_i32 : i32, i32
  }
}

module attributes {stable_mosaic.version = 11 : i64} {
  func.func @kernel(%arg0: i32, %arg1: memref<8x128xbf16, #tpu.memory_space<vmem>>, %arg2: memref<128x128xbf16, #tpu.memory_space<vmem>>, %arg3: memref<128x128xbf16, #tpu.memory_space<vmem>>, %arg4: memref<1x128xf32, #tpu.memory_space<vmem>>, %arg5: memref<8x128xf32, #tpu.memory_space<vmem>>, %arg6: memref<8x128xf32, #tpu.memory_space<vmem>>) attributes {dimension_semantics = [#tpu.dimension_semantics<arbitrary>], iteration_bounds = array<i64: 1>, scalar_prefetch = 0 : i64, scratch_operands = 1 : i64, tpu.core_type = #tpu.core_type<tc>, window_params = [{transform_indices = @transform_0, window_bounds = array<i64: 8, 128>}, {transform_indices = @transform_1, window_bounds = array<i64: 128, 128>}, {pipeline_mode = #tpu.pipeline_mode<synchronous>, transform_indices = @transform_2, window_bounds = array<i64: 128, 128>}, {pipeline_mode = #tpu.pipeline_mode<synchronous>, transform_indices = @transform_3, window_bounds = array<i64: 1, 128>}, {pipeline_mode = #tpu.pipeline_mode<synchronous>, transform_indices = @transform_4, window_bounds = array<i64: 8, 128>}]} {
    %c0_i32 = arith.constant 0 : i32
    %0 = arith.cmpi eq, %arg0, %c0_i32 : i32
    %1 = arith.extui %0 : i1 to i32
    %c0_i32_0 = arith.constant 0 : i32
    %2 = arith.cmpi ne, %1, %c0_i32_0 : i32
    scf.if %2 {
      %cst_10 = arith.constant 0.000000e+00 : f32
      %12 = vector.broadcast %cst_10 : f32 to vector<8x128xf32>
      %c0_11 = arith.constant 0 : index
      %c0_12 = arith.constant 0 : index
      %13 = vector.load %arg6[%c0_11, %c0_12] : memref<8x128xf32, #tpu.memory_space<vmem>>, vector<8x128xf32>
      tpu.vector_store %arg6[%c0_11, %c0_12], %12 {strides = array<i32>} : memref<8x128xf32, #tpu.memory_space<vmem>>, vector<8x128xf32>,
    } else {
    }
    %c0 = arith.constant 0 : index
    %c0_1 = arith.constant 0 : index
    %3 = vector.load %arg6[%c0, %c0_1] : memref<8x128xf32, #tpu.memory_space<vmem>>, vector<8x128xf32>
    %c0_2 = arith.constant 0 : index
    %c0_3 = arith.constant 0 : index
    %4 = vector.load %arg1[%c0_2, %c0_3] : memref<8x128xbf16, #tpu.memory_space<vmem>>, vector<8x128xbf16>
    %c0_4 = arith.constant 0 : index
    %c0_5 = arith.constant 0 : index
    %5 = vector.load %arg2[%c0_4, %c0_5] : memref<128x128xbf16, #tpu.memory_space<vmem>>, vector<128x128xbf16>
    %cst = arith.constant dense<0.000000e+00> : vector<8x128xf32>
    %6 = tpu.matmul %4, %5, %cst {dimension_numbers = #tpu.dot_dimension_numbers<[1], [0], [0], [1], [0, 0, 1, 1], [], []>} : vector<8x128xbf16>, vector<128x128xbf16>, vector<8x128xf32> -> vector<8x128xf32>
    %7 = arith.addf %3, %6 : vector<8x128xf32>
    %c0_6 = arith.constant 0 : index
    %c0_7 = arith.constant 0 : index
    %8 = vector.load %arg6[%c0_6, %c0_7] : memref<8x128xf32, #tpu.memory_space<vmem>>, vector<8x128xf32>
    tpu.vector_store %arg6[%c0_6, %c0_7], %7 {strides = array<i32>} : memref<8x128xf32, #tpu.memory_space<vmem>>, vector<8x128xf32>,
    %c0_i32_8 = arith.constant 0 : i32
    %9 = arith.cmpi eq, %arg0, %c0_i32_8 : i32
    %10 = arith.extui %9 : i1 to i32
    %c0_i32_9 = arith.constant 0 : i32
    %11 = arith.cmpi ne, %10, %c0_i32_9 : i32
    scf.if %11 {
      %c0_10 = arith.constant 0 : index
      %c0_11 = arith.constant 0 : index
      %12 = vector.load %arg6[%c0_10, %c0_11] : memref<8x128xf32, #tpu.memory_space<vmem>>, vector<8x128xf32>
      %13 = arith.truncf %12 : vector<8x128xf32> to vector<8x128xbf16>
      %c0_12 = arith.constant 0 : index
      %c0_13 = arith.constant 0 : index
      %14 = vector.load %arg3[%c0_12, %c0_13] : memref<128x128xbf16, #tpu.memory_space<vmem>>, vector<128x128xbf16>
      %cst_14 = arith.constant dense<0.000000e+00> : vector<8x128xf32>
      %15 = tpu.matmul %13, %14, %cst_14 {dimension_numbers = #tpu.dot_dimension_numbers<[1], [0], [0], [1], [0, 0, 1, 1], [], []>} : vector<8x128xbf16>, vector<128x128xbf16>, vector<8x128xf32> -> vector<8x128xf32>
      %c0_15 = arith.constant 0 : index
      %c0_16 = arith.constant 0 : index
      %16 = vector.load %arg4[%c0_15, %c0_16] : memref<1x128xf32, #tpu.memory_space<vmem>>, vector<1x128xf32>
      %17 = vector.broadcast %16 : vector<1x128xf32> to vector<8x128xf32>
      %18 = arith.addf %15, %17 : vector<8x128xf32>
      %c0_17 = arith.constant 0 : index
      %c0_18 = arith.constant 0 : index
      %19 = vector.load %arg5[%c0_17, %c0_18] : memref<8x128xf32, #tpu.memory_space<vmem>>, vector<8x128xf32>
      tpu.vector_store %arg5[%c0_17, %c0_18], %18 {strides = array<i32>} : memref<8x128xf32, #tpu.memory_space<vmem>>, vector<8x128xf32>,
    } else {
    }
    return
  }
  func.func @transform_0(%arg0: i32) -> (i32, i32) {
    %c0_i32 = arith.constant 0 : i32
    %c0_i32_0 = arith.constant 0 : i32
    return %c0_i32, %arg0 : i32, i32
  }
  func.func @transform_1(%arg0: i32) -> (i32, i32) {
    %c0_i32 = arith.constant 0 : i32
    %c0_i32_0 = arith.constant 0 : i32
    return %arg0, %c0_i32 : i32, i32
  }
  func.func @transform_2(%arg0: i32) -> (i32, i32) {
    %c0_i32 = arith.constant 0 : i32
    %c0_i32_0 = arith.constant 0 : i32
    %c0_i32_1 = arith.constant 0 : i32
    return %c0_i32, %c0_i32_0 : i32, i32
  }
  func.func @transform_3(%arg0: i32) -> (i32, i32) {
    %c0_i32 = arith.constant 0 : i32
    %c0_i32_0 = arith.constant 0 : i32
    %c0_i32_1 = arith.constant 0 : i32
    return %c0_i32, %c0_i32_0 : i32, i32
  }
  func.func @transform_4(%arg0: i32) -> (i32, i32) {
    %c0_i32 = arith.constant 0 : i32
    %c0_i32_0 = arith.constant 0 : i32
    %c0_i32_1 = arith.constant 0 : i32
    return %c0_i32, %c0_i32_0 : i32, i32
  }
}

</mosaic_0001>

<bundles_post_ra>
// kernel: oracle_net_gnn.8
= control target key start
LH: loop header
LB: loop body
LE: loop exit
PB: predicated region body
PF: predicated region fallthrough
CT: control target
= control target key end

     0   :  { %v751_v1 = vmov 0   ;;  %s927_s1 = inlined_call_operand.vmem [shape: bf16[128,128], index: 1, kind: input, shape index: {}]   ;;  %s928_s0 = inlined_call_operand.vmem [shape: bf16[128,128], index: 0, kind: input, shape index: {}]   ;;  %s929_s2 = inlined_call_operand.vmem [shape: f32[128,1], index: 2, kind: input, shape index: {}]   ;;  %s930_s3 = inlined_call_operand.vmem [shape: f32[1,128], index: 3, kind: input, shape index: {}]   ;;  %s931_s4 = inlined_call_operand.vmem [shape: bf16[128,128], index: 4, kind: output, shape index: {}]  }
   0x1   :  { %v735_v0 = vld [vmem:[%s927_s1] sm:$0xff]   ;;  %734 = vset.pattern.permute.xlu1 %v751_v1  ;;  %733 = vset.pattern.permute.xlu0 %v751_v1  ;;  %v736_v2 = vld [vmem:[%s927_s1 + $0x8] sm:$0xff]   ;;  %v737_v3 = vld [vmem:[%s927_s1 + $0x10] sm:$0xff]  }
   0x2   :  { %684 = vmatprep.subr.bf16.mxu0 %v735_v0  ;;  %716 = vmatprep.subr.bf16.mxu1 %v735_v0  ;;  %v738_v4 = vld [vmem:[%s927_s1 + $0x18] sm:$0xff]   ;;  %v743_v5 = vld [vmem:[%s928_s0] sm:$0xff]   ;;  %v740_v8 = vld [vmem:[%s927_s1 + $0x28] sm:$0xff]  }
   0x3   :  { %685 = vmatpush3.bf16.msra.mxu0 %v735_v0  ;;  %724 = vmatpush3.bf16.msra.mxu1 %v735_v0  ;;  %v744_v6 = vld [vmem:[%s928_s0 + $0x20] sm:$0xff]   ;;  %v337_v9 = vld [vmem:[%s929_s2 + $0x10] sm:$0xff]  ;;  %v338_v11 = vld [vmem:[%s929_s2 + $0x18] sm:$0xff] }
   0x4   :  { %686 = vmatprep.subr.bf16.mxu0 %v736_v2  ;;  %717 = vmatprep.subr.bf16.mxu1 %v736_v2  ;;  %v739_v7 = vld [vmem:[%s927_s1 + $0x20] sm:$0xff]   ;;  %v336_v12 = vld [vmem:[%s929_s2 + $0x8] sm:$0xff]  ;;  %v741_v13 = vld [vmem:[%s927_s1 + $0x30] sm:$0xff]  }
   0x5   :  { %700 = vmatprep.mubr.bf16.mxu0 %v743_v5  ;;  %708 = vmatprep.mubr.bf16.mxu1 %v744_v6  ;;  %v335_v10 = vld [vmem:[%s929_s2] sm:$0xff]  ;;  %v340_v14 = vld [vmem:[%s929_s2 + $0x28] sm:$0xff]  ;;  %v742_v16 = vld [vmem:[%s927_s1 + $0x38] sm:$0xff]  }
   0x6   :  { %363 = vperm.xlu1 %734, %v337_v9   ;;  %353 = vperm.xlu0 %733, %v335_v10   ;;  %v339_v15 = vld [vmem:[%s929_s2 + $0x20] sm:$0xff]  ;;  %v342_v17 = vld [vmem:[%s929_s2 + $0x38] sm:$0xff]  ;;  %v341_v18 = vld [vmem:[%s929_s2 + $0x30] sm:$0xff] }
   0x7   :  { %687 = vmatpush3.bf16.msra.mxu0 %v736_v2  ;;  %725 = vmatpush3.bf16.msra.mxu1 %v736_v2  ;;  %v745_v19 = vld [vmem:[%s928_s0 + $0x8] sm:$0xff]   ;;  %v343_v22 = vld [vmem:[%s929_s2 + $0x40] sm:$0xff]  ;;  %v747_v23 = vld [vmem:[%s928_s0 + $0x10] sm:$0xff]  }
   0x8   :  { %688 = vmatprep.subr.bf16.mxu0 %v737_v3  ;;  %718 = vmatprep.subr.bf16.mxu1 %v737_v3  ;;  %v746_v20 = vld [vmem:[%s928_s0 + $0x28] sm:$0xff]   ;;  %v748_v24 = vld [vmem:[%s928_s0 + $0x30] sm:$0xff]   ;;  %v346_v25 = vld [vmem:[%s929_s2 + $0x58] sm:$0xff] }
   0x9   :  { %v344_v21 = vld [vmem:[%s929_s2 + $0x48] sm:$0xff]  ;;  %v345_v26 = vld [vmem:[%s929_s2 + $0x50] sm:$0xff]  ;;  %v749_v27 = vld [vmem:[%s928_s0 + $0x18] sm:$0xff]  }
   0xa   :  { %368 = vperm.xlu1 %734, %v338_v11   ;;  %358 = vperm.xlu0 %733, %v336_v12   ;;  %v750_v28 = vld [vmem:[%s928_s0 + $0x38] sm:$0xff]   ;;  %v348_v29 = vld [vmem:[%s929_s2 + $0x68] sm:$0xff]  ;;  %v347_v30 = vld [vmem:[%s929_s2 + $0x60] sm:$0xff] }
   0xb   :  { %689 = vmatpush3.bf16.msra.mxu0 %v737_v3  ;;  %726 = vmatpush3.bf16.msra.mxu1 %v737_v3  ;;  %v350_v31 = vld [vmem:[%s929_s2 + $0x78] sm:$0xff]  ;;  %v349_v32 = vld [vmem:[%s929_s2 + $0x70] sm:$0xff]  ;;  %v882_v48 = vld [vmem:[%s930_s3] ss:$0 sm:$0xff] }
   0xc   :  { %690 = vmatprep.subr.bf16.mxu0 %v738_v4  ;;  %719 = vmatprep.subr.bf16.mxu1 %v738_v4 }
   0xe   :  { %378 = vperm.xlu1 %734, %v340_v14   ;;  %373 = vperm.xlu0 %733, %v339_v15  }
   0xf   :  { %691 = vmatpush3.bf16.msra.mxu0 %v738_v4  ;;  %727 = vmatpush3.bf16.msra.mxu1 %v738_v4 }
  0x10   :  { %692 = vmatprep.subr.bf16.mxu0 %v739_v7  ;;  %720 = vmatprep.subr.bf16.mxu1 %v739_v7 }
  0x12   :  { %388 = vperm.xlu1 %734, %v342_v17   ;;  %383 = vperm.xlu0 %733, %v341_v18  }
  0x13   :  { %693 = vmatpush3.bf16.msra.mxu0 %v739_v7  ;;  %728 = vmatpush3.bf16.msra.mxu1 %v739_v7 }
  0x14   :  { %694 = vmatprep.subr.bf16.mxu0 %v740_v8  ;;  %721 = vmatprep.subr.bf16.mxu1 %v740_v8 }
  0x16   :  { %398 = vperm.xlu1 %734, %v344_v21   ;;  %393 = vperm.xlu0 %733, %v343_v22  }
  0x17   :  { %695 = vmatpush3.bf16.msra.mxu0 %v740_v8  ;;  %729 = vmatpush3.bf16.msra.mxu1 %v740_v8 }
  0x18   :  { %696 = vmatprep.subr.bf16.mxu0 %v741_v13  ;;  %722 = vmatprep.subr.bf16.mxu1 %v741_v13 }
  0x1a   :  { %408 = vperm.xlu1 %734, %v346_v25   ;;  %403 = vperm.xlu0 %733, %v345_v26  }
  0x1b   :  { %697 = vmatpush3.bf16.msra.mxu0 %v741_v13  ;;  %730 = vmatpush3.bf16.msra.mxu1 %v741_v13 }
  0x1c   :  { %698 = vmatprep.subr.bf16.mxu0 %v742_v16  ;;  %723 = vmatprep.subr.bf16.mxu1 %v742_v16 }
  0x1e   :  { %418 = vperm.xlu1 %734, %v348_v29   ;;  %413 = vperm.xlu0 %733, %v347_v30  }
  0x1f   :  { %699 = vmatpush3.bf16.msra.mxu0 %v742_v16  ;;  %731 = vmatpush3.bf16.msra.mxu1 %v742_v16 }
  0x22   :  { %701 = vmatmul.mubr.bf16.vlgmr.msra.gmra.mrb[0].mxu0 %v745_v19  ;;  %709 = vmatmul.mubr.bf16.vlgmr.msra.gmra.mrb[0].mxu1 %v746_v20 }
  0x23   :  { %704 = vmatprep.mubr.bf16.mxu0 %v747_v23  ;;  %712 = vmatprep.mubr.bf16.mxu1 %v748_v24 }
  0x24   :  { %428 = vperm.xlu1 %734, %v350_v31   ;;  %423 = vperm.xlu0 %733, %v349_v32  }
  0x2a   :  { %705 = vmatmul.mubr.bf16.gmra.mrb[4].mxu0 %v749_v27  ;;  %713 = vmatmul.mubr.bf16.gmra.mrb[4].mxu1 %v750_v28 }
  0x85   :  { %v364_v33 = vpop.permute.xlu1 %363  ;;  %v354_v34 = vpop.permute.xlu0 %353 }
  0x89   :  { %v369_v35 = vpop.permute.xlu1 %368  ;;  %v359_v36 = vpop.permute.xlu0 %358 }
  0x8d   :  { %v873_v37 = vpop.permute.xlu1 %378  ;;  %v374_v38 = vpop.permute.xlu0 %373 }
  0x91   :  { %v875_v39 = vpop.permute.xlu1 %388  ;;  %v384_v40 = vpop.permute.xlu0 %383 }
  0x95   :  { %v399_v41 = vpop.permute.xlu1 %398  ;;  %v394_v42 = vpop.permute.xlu0 %393 }
  0x99   :  { %v409_v43 = vpop.permute.xlu1 %408  ;;  %v404_v44 = vpop.permute.xlu0 %403 }
  0x9d   :  { %v877_v45 = vpop.permute.xlu1 %418  ;;  %v414_v46 = vpop.permute.xlu0 %413 }
  0xa3   :  { %v429_v8 = vpop.permute.xlu1 %428  ;;  %v424_v9 = vpop.permute.xlu0 %423 }
  0xf5   :  { %v702_v47 = vpop.f32.mrb[0].mxu0  ;;  %v710_v49 = vpop.f32.mrb[0].mxu1 }
  0xf6   :  { %v433_v50 = vmul.f32 %v702_v47, %v364_v33  ;;  %v441_v51 = vmul.f32 %v710_v49, %v404_v44  ;;  %v221_v52 = vpop.f32.mrb[1].mxu0  ;;  %v253_v53 = vpop.f32.mrb[1].mxu1 }
  0xf7   :  { %v431_v54 = vmul.f32 %v354_v34, %v221_v52  ;;  %v439_v55 = vmul.f32 %v394_v42, %v253_v53  ;;  %v703_v56 = vpop.f32.mrb[2].mxu0  ;;  %v711_v57 = vpop.f32.mrb[2].mxu1 }
  0xf8   :  { %v456_v58 = vadd.f32 %v882_v48, %v433_v50  ;;  %v464_v59 = vadd.f32 %v882_v48, %v441_v51  ;;  %v434_v60 = vmul.f32 %v703_v56, %v369_v35  ;;  %v442_v61 = vmul.f32 %v711_v57, %v409_v43  ;;  %v224_v62 = vpop.f32.mrb[3].mxu0  ;;  %v256_v63 = vpop.f32.mrb[3].mxu1 }
  0xf9   :  { %v454_v0 = vadd.f32 %v882_v48, %v431_v54  ;;  %v462_v1 = vadd.f32 %v882_v48, %v439_v55  ;;  %v432_v2 = vmul.f32 %v359_v36, %v224_v62  ;;  %v440_v3 = vmul.f32 %v399_v41, %v256_v63 }
  0xfa   :  { %v457_v4 = vadd.f32 %v882_v48, %v434_v60  ;;  %v465_v5 = vadd.f32 %v882_v48, %v442_v61  ;;  %v472_v10 = vmax.f32 %v456_v58, 0.0  ;;  %v480_v11 = vmax.f32 %v464_v59, 0.0 }
  0xfb   :  { %v455_v6 = vadd.f32 %v882_v48, %v432_v2  ;;  %v463_v7 = vadd.f32 %v882_v48, %v440_v3  ;;  %v470_v14 = vmax.f32 %v454_v0, 0.0  ;;  %v478_v15 = vmax.f32 %v462_v1, 0.0 }
  0xfc   :  { %v473_v12 = vmax.f32 %v457_v4, 0.0  ;;  %v481_v13 = vmax.f32 %v465_v5, 0.0 }
  0xfd   :  { %v471_v16 = vmax.f32 %v455_v6, 0.0  ;;  %v479_v17 = vmax.f32 %v463_v7, 0.0  ;;  %v706_v18 = vpop.f32.mrb[4].mxu0  ;;  %v714_v19 = vpop.f32.mrb[4].mxu1 }
  0xfe   :  { %v629_v20 = vpack.c.bf16 %v473_v12, %v472_v10  ;;  %v649_v21 = vpack.c.bf16 %v481_v13, %v480_v11  ;;  %v437_v22 = vmul.f32 %v706_v18, %v384_v40  ;;  %v445_v23 = vmul.f32 %v714_v19, %v424_v9  ;;  %v237_v24 = vpop.f32.mrb[5].mxu0  ;;  %v269_v25 = vpop.f32.mrb[5].mxu1 }
  0xff   :  { %v624_v26 = vpack.c.bf16 %v471_v16, %v470_v14  ;;  %v644_v27 = vpack.c.bf16 %v479_v17, %v478_v15  ;;  %v435_v28 = vmul.f32 %v374_v38, %v237_v24  ;;  %v443_v29 = vmul.f32 %v414_v46, %v269_v25  ;;  %v707_v30 = vpop.f32.mrb[6].mxu0  ;;  %v715_v31 = vpop.f32.mrb[6].mxu1 }
 0x100   :  { %661 = vst [vmem:[%s931_s4 + $0x8] sm:$0xff] %v629_v20   ;;  %665 = vst [vmem:[%s931_s4 + $0x28] sm:$0xff] %v649_v21   ;;  %v460_v32 = vadd.f32 %v882_v48, %v437_v22  ;;  %v468_v33 = vadd.f32 %v882_v48, %v445_v23  ;;  %v438_v34 = vmul.f32 %v707_v30, %v875_v39  ;;  %v240_v36 = vpop.f32.mrb[7].mxu0  ;;  %v272_v38 = vpop.f32.mrb[7].mxu1 }
 0x101   :  { %v446_v35 = vmul.f32 %v715_v31, %v429_v8  ;;  %625 = vst [vmem:[%s931_s4] sm:$0xff] %v624_v26   ;;  %664 = vst [vmem:[%s931_s4 + $0x20] sm:$0xff] %v644_v27   ;;  %v458_v40 = vadd.f32 %v882_v48, %v435_v28  ;;  %v466_v41 = vadd.f32 %v882_v48, %v443_v29 }
 0x102   :  { %v436_v42 = vmul.f32 %v873_v37, %v240_v36  ;;  %v444_v43 = vmul.f32 %v877_v45, %v272_v38  ;;  %v461_v39 = vadd.f32 %v882_v48, %v438_v34  ;;  %v476_v49 = vmax.f32 %v460_v32, 0.0 }
 0x103   :  { %v469_v44 = vadd.f32 %v882_v48, %v446_v35  ;;  %v484_v50 = vmax.f32 %v468_v33, 0.0  ;;  %v474_v53 = vmax.f32 %v458_v40, 0.0  ;;  %v482_v54 = vmax.f32 %v466_v41, 0.0 }
 0x104   :  { %v459_v46 = vadd.f32 %v882_v48, %v436_v42  ;;  %v467_v47 = vadd.f32 %v882_v48, %v444_v43  ;;  %v477_v51 = vmax.f32 %v461_v39, 0.0 }
 0x105   :  { %v485_v52 = vmax.f32 %v469_v44, 0.0 }
 0x106   :  { %v475_v55 = vmax.f32 %v459_v46, 0.0  ;;  %v483_v56 = vmax.f32 %v467_v47, 0.0  ;;  %v639_v57 = vpack.c.bf16 %v477_v51, %v476_v49 }
 0x107   :  { %v659_v37 = vpack.c.bf16 %v485_v52, %v484_v50 }
 0x108   :  { %v634_v58 = vpack.c.bf16 %v475_v55, %v474_v53  ;;  %v654_v45 = vpack.c.bf16 %v483_v56, %v482_v54  ;;  %663 = vst [vmem:[%s931_s4 + $0x18] sm:$0xff] %v639_v57  }
 0x109   :  { %667 = vst [vmem:[%s931_s4 + $0x38] sm:$0xff] %v659_v37  }
 0x10a   :  { %662 = vst [vmem:[%s931_s4 + $0x10] sm:$0xff] %v634_v58   ;;  %666 = vst [vmem:[%s931_s4 + $0x30] sm:$0xff] %v654_v45  }

// kernel: oracle_net_gnn.6
= control target key start
LH: loop header
LB: loop body
LE: loop exit
PB: predicated region body
PF: predicated region fallthrough
CT: control target
= control target key end

     0   :  { %v767_v1 = vmov 0   ;;  %s958_s1 = inlined_call_operand.vmem [shape: bf16[128,128], index: 1, kind: input, shape index: {}]   ;;  %s959_s0 = inlined_call_operand.vmem [shape: bf16[128,128], index: 0, kind: input, shape index: {}]   ;;  %s960_s2 = inlined_call_operand.vmem [shape: f32[128,1], index: 2, kind: input, shape index: {}]   ;;  %s961_s3 = inlined_call_operand.vmem [shape: f32[1,128], index: 3, kind: input, shape index: {}]   ;;  %s962_s4 = inlined_call_operand.vmem [shape: bf16[128,128], index: 4, kind: output, shape index: {}]  }
   0x1   :  { %v751_v0 = vld [vmem:[%s958_s1] sm:$0xff]   ;;  %750 = vset.pattern.permute.xlu1 %v767_v1  ;;  %749 = vset.pattern.permute.xlu0 %v767_v1  ;;  %v752_v2 = vld [vmem:[%s958_s1 + $0x8] sm:$0xff]   ;;  %v753_v3 = vld [vmem:[%s958_s1 + $0x10] sm:$0xff]  }
   0x2   :  { %700 = vmatprep.subr.bf16.mxu0 %v751_v0  ;;  %732 = vmatprep.subr.bf16.mxu1 %v751_v0  ;;  %v754_v4 = vld [vmem:[%s958_s1 + $0x18] sm:$0xff]   ;;  %v759_v5 = vld [vmem:[%s959_s0] sm:$0xff]   ;;  %v756_v8 = vld [vmem:[%s958_s1 + $0x28] sm:$0xff]  }
   0x3   :  { %701 = vmatpush3.bf16.msra.mxu0 %v751_v0  ;;  %740 = vmatpush3.bf16.msra.mxu1 %v751_v0  ;;  %v760_v6 = vld [vmem:[%s959_s0 + $0x20] sm:$0xff]   ;;  %v337_v9 = vld [vmem:[%s960_s2 + $0x10] sm:$0xff]  ;;  %v338_v11 = vld [vmem:[%s960_s2 + $0x18] sm:$0xff] }
   0x4   :  { %702 = vmatprep.subr.bf16.mxu0 %v752_v2  ;;  %733 = vmatprep.subr.bf16.mxu1 %v752_v2  ;;  %v755_v7 = vld [vmem:[%s958_s1 + $0x20] sm:$0xff]   ;;  %v336_v12 = vld [vmem:[%s960_s2 + $0x8] sm:$0xff]  ;;  %v757_v13 = vld [vmem:[%s958_s1 + $0x30] sm:$0xff]  }
   0x5   :  { %716 = vmatprep.mubr.bf16.mxu0 %v759_v5  ;;  %724 = vmatprep.mubr.bf16.mxu1 %v760_v6  ;;  %v335_v10 = vld [vmem:[%s960_s2] sm:$0xff]  ;;  %v340_v14 = vld [vmem:[%s960_s2 + $0x28] sm:$0xff]  ;;  %v758_v16 = vld [vmem:[%s958_s1 + $0x38] sm:$0xff]  }
   0x6   :  { %363 = vperm.xlu1 %750, %v337_v9   ;;  %353 = vperm.xlu0 %749, %v335_v10   ;;  %v339_v15 = vld [vmem:[%s960_s2 + $0x20] sm:$0xff]  ;;  %v342_v17 = vld [vmem:[%s960_s2 + $0x38] sm:$0xff]  ;;  %v341_v18 = vld [vmem:[%s960_s2 + $0x30] sm:$0xff] }
   0x7   :  { %703 = vmatpush3.bf16.msra.mxu0 %v752_v2  ;;  %741 = vmatpush3.bf16.msra.mxu1 %v752_v2  ;;  %v761_v19 = vld [vmem:[%s959_s0 + $0x8] sm:$0xff]   ;;  %v343_v22 = vld [vmem:[%s960_s2 + $0x40] sm:$0xff]  ;;  %v763_v23 = vld [vmem:[%s959_s0 + $0x10] sm:$0xff]  }
   0x8   :  { %704 = vmatprep.subr.bf16.mxu0 %v753_v3  ;;  %734 = vmatprep.subr.bf16.mxu1 %v753_v3  ;;  %v762_v20 = vld [vmem:[%s959_s0 + $0x28] sm:$0xff]   ;;  %v764_v24 = vld [vmem:[%s959_s0 + $0x30] sm:$0xff]   ;;  %v346_v25 = vld [vmem:[%s960_s2 + $0x58] sm:$0xff] }
   0x9   :  { %v344_v21 = vld [vmem:[%s960_s2 + $0x48] sm:$0xff]  ;;  %v345_v26 = vld [vmem:[%s960_s2 + $0x50] sm:$0xff]  ;;  %v765_v27 = vld [vmem:[%s959_s0 + $0x18] sm:$0xff]  }
   0xa   :  { %368 = vperm.xlu1 %750, %v338_v11   ;;  %358 = vperm.xlu0 %749, %v336_v12   ;;  %v766_v28 = vld [vmem:[%s959_s0 + $0x38] sm:$0xff]   ;;  %v348_v29 = vld [vmem:[%s960_s2 + $0x68] sm:$0xff]  ;;  %v347_v30 = vld [vmem:[%s960_s2 + $0x60] sm:$0xff] }
   0xb   :  { %705 = vmatpush3.bf16.msra.mxu0 %v753_v3  ;;  %742 = vmatpush3.bf16.msra.mxu1 %v753_v3  ;;  %v350_v31 = vld [vmem:[%s960_s2 + $0x78] sm:$0xff]  ;;  %v349_v32 = vld [vmem:[%s960_s2 + $0x70] sm:$0xff]  ;;  %v902_v47 = vld [vmem:[%s961_s3] ss:$0 sm:$0xff] }
   0xc   :  { %706 = vmatprep.subr.bf16.mxu0 %v754_v4  ;;  %735 = vmatprep.subr.bf16.mxu1 %v754_v4 }
   0xe   :  { %378 = vperm.xlu1 %750, %v340_v14   ;;  %373 = vperm.xlu0 %749, %v339_v15  }
   0xf   :  { %707 = vmatpush3.bf16.msra.mxu0 %v754_v4  ;;  %743 = vmatpush3.bf16.msra.mxu1 %v754_v4 }
  0x10   :  { %708 = vmatprep.subr.bf16.mxu0 %v755_v7  ;;  %736 = vmatprep.subr.bf16.mxu1 %v755_v7 }
  0x12   :  { %388 = vperm.xlu1 %750, %v342_v17   ;;  %383 = vperm.xlu0 %749, %v341_v18  }
  0x13   :  { %709 = vmatpush3.bf16.msra.mxu0 %v755_v7  ;;  %744 = vmatpush3.bf16.msra.mxu1 %v755_v7 }
  0x14   :  { %710 = vmatprep.subr.bf16.mxu0 %v756_v8  ;;  %737 = vmatprep.subr.bf16.mxu1 %v756_v8 }
  0x16   :  { %398 = vperm.xlu1 %750, %v344_v21   ;;  %393 = vperm.xlu0 %749, %v343_v22  }
  0x17   :  { %711 = vmatpush3.bf16.msra.mxu0 %v756_v8  ;;  %745 = vmatpush3.bf16.msra.mxu1 %v756_v8 }
  0x18   :  { %712 = vmatprep.subr.bf16.mxu0 %v757_v13  ;;  %738 = vmatprep.subr.bf16.mxu1 %v757_v13 }
  0x1a   :  { %408 = vperm.xlu1 %750, %v346_v25   ;;  %403 = vperm.xlu0 %749, %v345_v26  }
  0x1b   :  { %713 = vmatpush3.bf16.msra.mxu0 %v757_v13  ;;  %746 = vmatpush3.bf16.msra.mxu1 %v757_v13 }
  0x1c   :  { %714 = vmatprep.subr.bf16.mxu0 %v758_v16  ;;  %739 = vmatprep.subr.bf16.mxu1 %v758_v16 }
  0x1e   :  { %418 = vperm.xlu1 %750, %v348_v29   ;;  %413 = vperm.xlu0 %749, %v347_v30  }
  0x1f   :  { %715 = vmatpush3.bf16.msra.mxu0 %v758_v16  ;;  %747 = vmatpush3.bf16.msra.mxu1 %v758_v16 }
  0x22   :  { %717 = vmatmul.mubr.bf16.vlgmr.msra.gmra.mrb[0].mxu0 %v761_v19  ;;  %725 = vmatmul.mubr.bf16.vlgmr.msra.gmra.mrb[0].mxu1 %v762_v20 }
  0x23   :  { %720 = vmatprep.mubr.bf16.mxu0 %v763_v23  ;;  %728 = vmatprep.mubr.bf16.mxu1 %v764_v24 }
  0x24   :  { %428 = vperm.xlu1 %750, %v350_v31   ;;  %423 = vperm.xlu0 %749, %v349_v32  }
  0x2a   :  { %721 = vmatmul.mubr.bf16.gmra.mrb[4].mxu0 %v765_v27  ;;  %729 = vmatmul.mubr.bf16.gmra.mrb[4].mxu1 %v766_v28 }
  0x85   :  { %v354_v33 = vpop.permute.xlu0 %353  ;;  %v364_v34 = vpop.permute.xlu1 %363 }
  0x89   :  { %v359_v35 = vpop.permute.xlu0 %358  ;;  %v369_v36 = vpop.permute.xlu1 %368 }
  0x8d   :  { %v889_v37 = vpop.permute.xlu0 %373  ;;  %v891_v38 = vpop.permute.xlu1 %378 }
  0x91   :  { %v893_v39 = vpop.permute.xlu0 %383  ;;  %v895_v40 = vpop.permute.xlu1 %388 }
  0x95   :  { %v394_v41 = vpop.permute.xlu0 %393  ;;  %v399_v42 = vpop.permute.xlu1 %398 }
  0x99   :  { %v404_v43 = vpop.permute.xlu0 %403  ;;  %v409_v44 = vpop.permute.xlu1 %408 }
  0x9d   :  { %v897_v45 = vpop.permute.xlu0 %413  ;;  %v910_v7 = vpop.permute.xlu1 %418 }
  0xa3   :  { %v424_v12 = vpop.permute.xlu0 %423 }
  0xf5   :  { %v718_v46 = vpop.f32.mrb[0].mxu0  ;;  %v726_v48 = vpop.f32.mrb[0].mxu1 }
  0xf6   :  { %v433_v49 = vmul.f32 %v718_v46, %v364_v34  ;;  %v441_v50 = vmul.f32 %v726_v48, %v404_v43  ;;  %v221_v51 = vpop.f32.mrb[1].mxu0  ;;  %v253_v52 = vpop.f32.mrb[1].mxu1 }
  0xf7   :  { %v431_v53 = vmul.f32 %v354_v33, %v221_v51  ;;  %v439_v54 = vmul.f32 %v394_v41, %v253_v52  ;;  %v719_v55 = vpop.f32.mrb[2].mxu0  ;;  %v727_v56 = vpop.f32.mrb[2].mxu1 }
  0xf8   :  { %v456_v57 = vadd.f32 %v902_v47, %v433_v49  ;;  %v464_v58 = vadd.f32 %v902_v47, %v441_v50  ;;  %v434_v59 = vmul.f32 %v719_v55, %v369_v36  ;;  %v442_v60 = vmul.f32 %v727_v56, %v409_v44  ;;  %v224_v61 = vpop.f32.mrb[3].mxu0  ;;  %v256_v62 = vpop.f32.mrb[3].mxu1 }
  0xf9   :  { %v454_v63 = vadd.f32 %v902_v47, %v431_v53  ;;  %v462_v0 = vadd.f32 %v902_v47, %v439_v54  ;;  %v432_v1 = vmul.f32 %v359_v35, %v224_v61  ;;  %v440_v2 = vmul.f32 %v399_v42, %v256_v62  ;;  %v429_v49 = vpop.permute.xlu1 %428 }
  0xfa   :  { %v472_v3 = vmax.f32 %v456_v57, 0.0  ;;  %v480_v4 = vmax.f32 %v464_v58, 0.0  ;;  %v457_v5 = vadd.f32 %v902_v47, %v434_v59  ;;  %v465_v6 = vadd.f32 %v902_v47, %v442_v60 }
  0xfb   :  { %v470_v8 = vmax.f32 %v454_v63, 0.0  ;;  %v478_v9 = vmax.f32 %v462_v0, 0.0  ;;  %v455_v10 = vadd.f32 %v902_v47, %v432_v1  ;;  %v463_v11 = vadd.f32 %v902_v47, %v440_v2 }
  0xfc   :  { %v488_v13 = vmul.f32 %v472_v3, %v364_v34  ;;  %v496_v14 = vmul.f32 %v480_v4, %v404_v43  ;;  %v473_v15 = vmax.f32 %v457_v5, 0.0  ;;  %v481_v16 = vmax.f32 %v465_v6, 0.0 }
  0xfd   :  { %v486_v17 = vmul.f32 %v470_v8, %v354_v33  ;;  %v494_v18 = vmul.f32 %v478_v9, %v394_v41  ;;  %v471_v19 = vmax.f32 %v455_v10, 0.0  ;;  %v479_v20 = vmax.f32 %v463_v11, 0.0  ;;  %v722_v21 = vpop.f32.mrb[4].mxu0  ;;  %v730_v22 = vpop.f32.mrb[4].mxu1 }
  0xfe   :  { %v489_v23 = vmul.f32 %v473_v15, %v369_v36  ;;  %v497_v24 = vmul.f32 %v481_v16, %v409_v44  ;;  %v437_v25 = vmul.f32 %v722_v21, %v893_v39  ;;  %v445_v26 = vmul.f32 %v730_v22, %v424_v12  ;;  %v237_v27 = vpop.f32.mrb[5].mxu0  ;;  %v269_v28 = vpop.f32.mrb[5].mxu1 }
  0xff   :  { %v487_v29 = vmul.f32 %v471_v19, %v359_v35  ;;  %v495_v30 = vmul.f32 %v479_v20, %v399_v42  ;;  %v435_v31 = vmul.f32 %v889_v37, %v237_v27  ;;  %v443_v32 = vmul.f32 %v897_v45, %v269_v28  ;;  %v723_v34 = vpop.f32.mrb[6].mxu0  ;;  %v731_v33 = vpop.f32.mrb[6].mxu1 }
 0x100   :  { %v645_v41 = vpack.c.bf16 %v489_v23, %v488_v13  ;;  %v665_v43 = vpack.c.bf16 %v497_v24, %v496_v14  ;;  %v460_v46 = vadd.f32 %v902_v47, %v437_v25  ;;  %v468_v36 = vadd.f32 %v902_v47, %v445_v26  ;;  %v240_v44 = vpop.f32.mrb[7].mxu0  ;;  %v272_v48 = vpop.f32.mrb[7].mxu1 }
 0x101   :  { %v640_v50 = vpack.c.bf16 %v487_v29, %v486_v17  ;;  %v660_v51 = vpack.c.bf16 %v495_v30, %v494_v18  ;;  %v458_v35 = vadd.f32 %v902_v47, %v435_v31  ;;  %v466_v42 = vadd.f32 %v902_v47, %v443_v32 }
 0x102   :  { %677 = vst [vmem:[%s962_s4 + $0x8] sm:$0xff] %v645_v41   ;;  %681 = vst [vmem:[%s962_s4 + $0x28] sm:$0xff] %v665_v43   ;;  %v438_v52 = vmul.f32 %v723_v34, %v895_v40  ;;  %v446_v53 = vmul.f32 %v731_v33, %v429_v49  ;;  %v436_v54 = vmul.f32 %v891_v38, %v240_v44  ;;  %v476_v56 = vmax.f32 %v460_v46, 0.0 }
 0x103   :  { %641 = vst [vmem:[%s962_s4] sm:$0xff] %v640_v50   ;;  %680 = vst [vmem:[%s962_s4 + $0x20] sm:$0xff] %v660_v51   ;;  %v444_v55 = vmul.f32 %v910_v7, %v272_v48  ;;  %v484_v57 = vmax.f32 %v468_v36, 0.0  ;;  %v474_v60 = vmax.f32 %v458_v35, 0.0  ;;  %v482_v61 = vmax.f32 %v466_v42, 0.0 }
 0x104   :  { %v461_v58 = vadd.f32 %v902_v47, %v438_v52  ;;  %v469_v59 = vadd.f32 %v902_v47, %v446_v53  ;;  %v459_v62 = vadd.f32 %v902_v47, %v436_v54  ;;  %v492_v4 = vmul.f32 %v476_v56, %v893_v39 }
 0x105   :  { %v467_v63 = vadd.f32 %v902_v47, %v444_v55  ;;  %v500_v5 = vmul.f32 %v484_v57, %v424_v12  ;;  %v490_v9 = vmul.f32 %v474_v60, %v889_v37  ;;  %v498_v10 = vmul.f32 %v482_v61, %v897_v45 }
 0x106   :  { %v477_v0 = vmax.f32 %v461_v58, 0.0  ;;  %v485_v1 = vmax.f32 %v469_v59, 0.0  ;;  %v475_v2 = vmax.f32 %v459_v62, 0.0 }
 0x107   :  { %v483_v3 = vmax.f32 %v467_v63, 0.0 }
 0x108   :  { %v493_v6 = vmul.f32 %v477_v0, %v895_v40  ;;  %v501_v8 = vmul.f32 %v485_v1, %v429_v49  ;;  %v491_v11 = vmul.f32 %v475_v2, %v891_v38 }
 0x109   :  { %v499_v13 = vmul.f32 %v483_v3, %v910_v7 }
 0x10a   :  { %v655_v14 = vpack.c.bf16 %v493_v6, %v492_v4  ;;  %v675_v47 = vpack.c.bf16 %v501_v8, %v500_v5  ;;  %v650_v15 = vpack.c.bf16 %v491_v11, %v490_v9 }
 0x10b   :  { %v670_v16 = vpack.c.bf16 %v499_v13, %v498_v10 }
 0x10c   :  { %679 = vst [vmem:[%s962_s4 + $0x18] sm:$0xff] %v655_v14   ;;  %683 = vst [vmem:[%s962_s4 + $0x38] sm:$0xff] %v675_v47  }
 0x10d   :  { %678 = vst [vmem:[%s962_s4 + $0x10] sm:$0xff] %v650_v15   ;;  %682 = vst [vmem:[%s962_s4 + $0x30] sm:$0xff] %v670_v16  }

// kernel: oracle_net_gnn.5
= control target key start
LH: loop header
LB: loop body
LE: loop exit
PB: predicated region body
PF: predicated region fallthrough
CT: control target
= control target key end

     0   :  { %s670_s1 = inlined_call_operand.vmem [shape: bf16[128,128], index: 1, kind: input, shape index: {}]   ;;  %s671_s0 = inlined_call_operand.vmem [shape: bf16[128,128], index: 0, kind: input, shape index: {}]   ;;  %s672_s2 = inlined_call_operand.vmem [shape: bf16[128,128], index: 2, kind: output, shape index: {}]  }
   0x1   :  { %v567_v0 = vld [vmem:[%s670_s1] sm:$0xff]   ;;  %v568_v1 = vld [vmem:[%s670_s1 + $0x8] sm:$0xff]   ;;  %v569_v2 = vld [vmem:[%s670_s1 + $0x10] sm:$0xff]  }
   0x2   :  { %519 = vmatprep.subr.bf16.mxu0 %v567_v0  ;;  %551 = vmatprep.subr.bf16.mxu1 %v567_v0  ;;  %v570_v3 = vld [vmem:[%s670_s1 + $0x18] sm:$0xff]   ;;  %v575_v4 = vld [vmem:[%s671_s0] sm:$0xff]   ;;  %v572_v7 = vld [vmem:[%s670_s1 + $0x28] sm:$0xff]  }
   0x3   :  { %520 = vmatpush3.bf16.msra.mxu0 %v567_v0  ;;  %559 = vmatpush3.bf16.msra.mxu1 %v567_v0  ;;  %v576_v5 = vld [vmem:[%s671_s0 + $0x20] sm:$0xff]   ;;  %v573_v8 = vld [vmem:[%s670_s1 + $0x30] sm:$0xff]   ;;  %v574_v9 = vld [vmem:[%s670_s1 + $0x38] sm:$0xff]  }
   0x4   :  { %521 = vmatprep.subr.bf16.mxu0 %v568_v1  ;;  %552 = vmatprep.subr.bf16.mxu1 %v568_v1  ;;  %v571_v6 = vld [vmem:[%s670_s1 + $0x20] sm:$0xff]   ;;  %v577_v10 = vld [vmem:[%s671_s0 + $0x8] sm:$0xff]   ;;  %v579_v12 = vld [vmem:[%s671_s0 + $0x10] sm:$0xff]  }
   0x5   :  { %535 = vmatprep.mubr.bf16.mxu0 %v575_v4  ;;  %543 = vmatprep.mubr.bf16.mxu1 %v576_v5  ;;  %v578_v11 = vld [vmem:[%s671_s0 + $0x28] sm:$0xff]   ;;  %v580_v13 = vld [vmem:[%s671_s0 + $0x30] sm:$0xff]   ;;  %v581_v14 = vld [vmem:[%s671_s0 + $0x18] sm:$0xff]  }
   0x6   :  { %v582_v15 = vld [vmem:[%s671_s0 + $0x38] sm:$0xff]  }
   0x7   :  { %522 = vmatpush3.bf16.msra.mxu0 %v568_v1  ;;  %560 = vmatpush3.bf16.msra.mxu1 %v568_v1 }
   0x8   :  { %523 = vmatprep.subr.bf16.mxu0 %v569_v2  ;;  %553 = vmatprep.subr.bf16.mxu1 %v569_v2 }
   0xb   :  { %524 = vmatpush3.bf16.msra.mxu0 %v569_v2  ;;  %561 = vmatpush3.bf16.msra.mxu1 %v569_v2 }
   0xc   :  { %525 = vmatprep.subr.bf16.mxu0 %v570_v3  ;;  %554 = vmatprep.subr.bf16.mxu1 %v570_v3 }
   0xf   :  { %526 = vmatpush3.bf16.msra.mxu0 %v570_v3  ;;  %562 = vmatpush3.bf16.msra.mxu1 %v570_v3 }
  0x10   :  { %527 = vmatprep.subr.bf16.mxu0 %v571_v6  ;;  %555 = vmatprep.subr.bf16.mxu1 %v571_v6 }
  0x13   :  { %528 = vmatpush3.bf16.msra.mxu0 %v571_v6  ;;  %563 = vmatpush3.bf16.msra.mxu1 %v571_v6 }
  0x14   :  { %529 = vmatprep.subr.bf16.mxu0 %v572_v7  ;;  %556 = vmatprep.subr.bf16.mxu1 %v572_v7 }
  0x17   :  { %530 = vmatpush3.bf16.msra.mxu0 %v572_v7  ;;  %564 = vmatpush3.bf16.msra.mxu1 %v572_v7 }
  0x18   :  { %531 = vmatprep.subr.bf16.mxu0 %v573_v8  ;;  %557 = vmatprep.subr.bf16.mxu1 %v573_v8 }
  0x1b   :  { %532 = vmatpush3.bf16.msra.mxu0 %v573_v8  ;;  %565 = vmatpush3.bf16.msra.mxu1 %v573_v8 }
  0x1c   :  { %533 = vmatprep.subr.bf16.mxu0 %v574_v9  ;;  %558 = vmatprep.subr.bf16.mxu1 %v574_v9 }
  0x1f   :  { %534 = vmatpush3.bf16.msra.mxu0 %v574_v9  ;;  %566 = vmatpush3.bf16.msra.mxu1 %v574_v9 }
  0x22   :  { %536 = vmatmul.mubr.bf16.vlgmr.msra.gmra.mrb[0].mxu0 %v577_v10  ;;  %544 = vmatmul.mubr.bf16.vlgmr.msra.gmra.mrb[0].mxu1 %v578_v11 }
  0x23   :  { %539 = vmatprep.mubr.bf16.mxu0 %v579_v12  ;;  %547 = vmatprep.mubr.bf16.mxu1 %v580_v13 }
  0x2a   :  { %540 = vmatmul.mubr.bf16.gmra.mrb[4].mxu0 %v581_v14  ;;  %548 = vmatmul.mubr.bf16.gmra.mrb[4].mxu1 %v582_v15 }
  0xf5   :  { %v537_v16 = vpop.f32.mrb[0].mxu0  ;;  %v545_v17 = vpop.f32.mrb[0].mxu1 }
  0xf6   :  { %v210_v18 = vpop.f32.mrb[1].mxu0  ;;  %v242_v19 = vpop.f32.mrb[1].mxu1 }
  0xf7   :  { %v538_v20 = vpop.f32.mrb[2].mxu0  ;;  %v546_v21 = vpop.f32.mrb[2].mxu1 }
  0xf8   :  { %v464_v22 = vpack.c.bf16 %v538_v20, %v537_v16  ;;  %v484_v23 = vpack.c.bf16 %v546_v21, %v545_v17  ;;  %v213_v24 = vpop.f32.mrb[3].mxu0  ;;  %v245_v25 = vpop.f32.mrb[3].mxu1 }
  0xf9   :  { %v459_v26 = vpack.c.bf16 %v213_v24, %v210_v18  ;;  %v479_v27 = vpack.c.bf16 %v245_v25, %v242_v19 }
  0xfa   :  { %496 = vst [vmem:[%s672_s2 + $0x8] sm:$0xff] %v464_v22   ;;  %500 = vst [vmem:[%s672_s2 + $0x28] sm:$0xff] %v484_v23  }
  0xfb   :  { %460 = vst [vmem:[%s672_s2] sm:$0xff] %v459_v26   ;;  %499 = vst [vmem:[%s672_s2 + $0x20] sm:$0xff] %v479_v27  }
  0xfd   :  { %v541_v28 = vpop.f32.mrb[4].mxu0  ;;  %v549_v29 = vpop.f32.mrb[4].mxu1 }
  0xfe   :  { %v226_v30 = vpop.f32.mrb[5].mxu0  ;;  %v258_v31 = vpop.f32.mrb[5].mxu1 }
  0xff   :  { %v542_v32 = vpop.f32.mrb[6].mxu0  ;;  %v550_v33 = vpop.f32.mrb[6].mxu1 }
 0x100   :  { %v474_v34 = vpack.c.bf16 %v542_v32, %v541_v28  ;;  %v494_v35 = vpack.c.bf16 %v550_v33, %v549_v29  ;;  %v229_v36 = vpop.f32.mrb[7].mxu0  ;;  %v261_v37 = vpop.f32.mrb[7].mxu1 }
 0x101   :  { %v469_v38 = vpack.c.bf16 %v229_v36, %v226_v30  ;;  %v489_v39 = vpack.c.bf16 %v261_v37, %v258_v31 }
 0x102   :  { %498 = vst [vmem:[%s672_s2 + $0x18] sm:$0xff] %v474_v34   ;;  %502 = vst [vmem:[%s672_s2 + $0x38] sm:$0xff] %v494_v35  }
 0x103   :  { %497 = vst [vmem:[%s672_s2 + $0x10] sm:$0xff] %v469_v38   ;;  %501 = vst [vmem:[%s672_s2 + $0x30] sm:$0xff] %v489_v39  }

// kernel: oracle_net_gnn.9
= control target key start
LH: loop header
LB: loop body
LE: loop exit
PB: predicated region body
PF: predicated region fallthrough
CT: control target
= control target key end

     0   :  { %v345_v0 = vmov 0.0   ;;  %vm346_vm0 = vmmov 0   ;;  %s429_s1 = inlined_call_operand.vmem [shape: bf16[128,128], index: 1, kind: input, shape index: {}]   ;;  %s430_s2 = inlined_call_operand.vmem [shape: bf16[128,128], index: 2, kind: input, shape index: {}]   ;;  %s431_s0 = inlined_call_operand.vmem [shape: bf16[8,128], index: 0, kind: input, shape index: {}]   ;;  %s432_s3 = inlined_call_operand.vmem [shape: f32[1,128], index: 3, kind: input, shape index: {}]   ;;  %s433_s4 = inlined_call_operand.vmem [shape: f32[8,128], index: 4, kind: output, shape index: {}]  }
   0x1   :  { %287 = vmatprep.subr.bf16.mxu0 %v345_v0  ;;  %v329_v1 = vld [vmem:[%s429_s1] sm:$0xff]   ;;  %303 = vmatprep.mubr.msk.bf16.mxu0 %vm346_vm0, %v345_v0  ;;  %v330_v2 = vld [vmem:[%s429_s1 + $0x8] sm:$0xff]   ;;  %v331_v3 = vld [vmem:[%s429_s1 + $0x10] sm:$0xff]  }
   0x2   :  { %307 = vmatprep.subr.bf16.mxu1 %v345_v0  ;;  %323 = vmatprep.mubr.msk.bf16.mxu1 %vm346_vm0, %v345_v0  ;;  %v337_v4 = vld [vmem:[%s430_s2] sm:$0xff]   ;;  %v332_v5 = vld [vmem:[%s429_s1 + $0x18] sm:$0xff]   ;;  %v338_v6 = vld [vmem:[%s430_s2 + $0x8] sm:$0xff]  }
   0x3   :  { %288 = vmatpush3.bf16.msra.mxu0 %v329_v1  ;;  %308 = vmatpush3.bf16.msra.mxu1 %v337_v4  ;;  %v333_v7 = vld [vmem:[%s429_s1 + $0x20] sm:$0xff]   ;;  %v339_v8 = vld [vmem:[%s430_s2 + $0x10] sm:$0xff]   ;;  %v334_v9 = vld [vmem:[%s429_s1 + $0x28] sm:$0xff]  }
   0x4   :  { %289 = vmatprep.subr.bf16.mxu0 %v345_v0  ;;  %309 = vmatprep.subr.bf16.mxu1 %v345_v0  ;;  %v340_v10 = vld [vmem:[%s430_s2 + $0x18] sm:$0xff]   ;;  %v335_v11 = vld [vmem:[%s429_s1 + $0x30] sm:$0xff]   ;;  %v341_v12 = vld [vmem:[%s430_s2 + $0x20] sm:$0xff]  }
   0x5   :  { %v336_v13 = vld [vmem:[%s429_s1 + $0x38] sm:$0xff]   ;;  %v342_v14 = vld [vmem:[%s430_s2 + $0x28] sm:$0xff]   ;;  %v24_v15 = vld [vmem:[%s431_s0] sm:$0xf] }
   0x6   :  { %v343_v16 = vld [vmem:[%s430_s2 + $0x30] sm:$0xff]   ;;  %v344_v17 = vld [vmem:[%s430_s2 + $0x38] sm:$0xff]   ;;  %v260_v23 = vld [vmem:[%s432_s3] ss:$0 sm:$0xff] }
   0x7   :  { %290 = vmatpush3.bf16.msra.mxu0 %v330_v2  ;;  %310 = vmatpush3.bf16.msra.mxu1 %v338_v6 }
   0x8   :  { %291 = vmatprep.subr.bf16.mxu0 %v345_v0  ;;  %311 = vmatprep.subr.bf16.mxu1 %v345_v0 }
   0xb   :  { %292 = vmatpush3.bf16.msra.mxu0 %v331_v3  ;;  %312 = vmatpush3.bf16.msra.mxu1 %v339_v8 }
   0xc   :  { %293 = vmatprep.subr.bf16.mxu0 %v345_v0  ;;  %313 = vmatprep.subr.bf16.mxu1 %v345_v0 }
   0xf   :  { %294 = vmatpush3.bf16.msra.mxu0 %v332_v5  ;;  %314 = vmatpush3.bf16.msra.mxu1 %v340_v10 }
  0x10   :  { %295 = vmatprep.subr.bf16.mxu0 %v345_v0  ;;  %315 = vmatprep.subr.bf16.mxu1 %v345_v0 }
  0x13   :  { %296 = vmatpush3.bf16.msra.mxu0 %v333_v7  ;;  %316 = vmatpush3.bf16.msra.mxu1 %v341_v12 }
  0x14   :  { %297 = vmatprep.subr.bf16.mxu0 %v345_v0  ;;  %317 = vmatprep.subr.bf16.mxu1 %v345_v0 }
  0x17   :  { %298 = vmatpush3.bf16.msra.mxu0 %v334_v9  ;;  %318 = vmatpush3.bf16.msra.mxu1 %v342_v14 }
  0x18   :  { %299 = vmatprep.subr.bf16.mxu0 %v345_v0  ;;  %319 = vmatprep.subr.bf16.mxu1 %v345_v0 }
  0x1b   :  { %300 = vmatpush3.bf16.msra.mxu0 %v335_v11  ;;  %320 = vmatpush3.bf16.msra.mxu1 %v343_v16 }
  0x1c   :  { %301 = vmatprep.subr.bf16.mxu0 %v345_v0  ;;  %321 = vmatprep.subr.bf16.mxu1 %v345_v0 }
  0x1f   :  { %302 = vmatpush3.bf16.msra.mxu0 %v336_v13  ;;  %322 = vmatpush3.bf16.msra.mxu1 %v344_v17 }
  0x22   :  { %304 = vmatmul.mubr.bf16.vlgmr.msra.gmra.mrb[0].mxu0 %v24_v15 }
  0xf5   :  { %v123_v18 = vpop.f32.mrb[0].mxu0 }
  0xf6   :  { %v135_v19 = vpack.c.bf16 %v123_v18, %v123_v18  ;;  %v305_v20 = vpop.f32.mrb[1].mxu0 }
  0xf7   :  { %v126_v21 = vpop.f32.mrb[2].mxu0 }
  0xf8   :  { %v306_v22 = vpop.f32.mrb[3].mxu0  ;;  %324 = vmatmul.mubr.bf16.vlgmr.msra.gmra.mrb[0].mxu1 %v135_v19 }
 0x1cb   :  { %v241_v24 = vpop.f32.mrb[0].mxu1 }
 0x1cc   :  { %v242_v25 = vadd.f32 %v260_v23, %v241_v24  ;;  %v325_v26 = vpop.f32.mrb[1].mxu1 }
 0x1cd   :  { %v244_v27 = vpop.f32.mrb[2].mxu1 }
 0x1ce   :  { %247 = vst [vmem:[%s433_s4] sm:$0xff] %v242_v25  ;;  %v326_v28 = vpop.f32.mrb[3].mxu1 }

</bundles_post_ra>
